<compile_context>
chip_gen: v7x
topology: tpu7x:2x2x1
jax: 0.10.0
libtpu: 0.0.40
codegen_flags: <defaults>
</compile_context>

<pallas_src>
import functools

import jax
import jax.numpy as jnp
from jax.experimental import pallas as pl
from jax.experimental.pallas import tpu as pltpu

P_DROPOUT = 0.2


def _round_up(x, m):
    return (x + m - 1) // m * m


# --------------------------------------------------------------------------
# Fused Highway kernel: one row-tile per grid step
# --------------------------------------------------------------------------
def _highway_kernel(x_ref, w_ref, b_ref, u_ref, o_ref, *, d_pad):
    # x_ref: (TN, Dp) f32        row tile of the (padded) input
    # w_ref: (Dp, 2*Dp) bf16     [Wg^T | Wt^T] fused weight
    # b_ref: (1, 2*Dp) f32       [bg | bt] fused bias
    # u_ref: (TN, Dp) f32        uniform randoms in [0, 1) for dropout
    # o_ref: (TN, Dp) f32        output tile
    x = x_ref[...]

    # One MXU matmul computes both projections (bf16 operands, f32 accumulate).
    gates = jnp.dot(x.astype(jnp.bfloat16), w_ref[...],
                    preferred_element_type=jnp.float32) + b_ref[...]

    g = jax.nn.sigmoid(gates[:, :d_pad])          # lane-aligned slice (Dp % 128 == 0)
    t = jnp.maximum(gates[:, d_pad:], 0.0)

    # Fused dropout (training-mode semantics, keep-prob 1 - P_DROPOUT).
    keep = (u_ref[...] >= P_DROPOUT).astype(jnp.float32)
    t = t * keep * (1.0 / (1.0 - P_DROPOUT))

    o_ref[...] = g * t + (1.0 - g) * x


# --------------------------------------------------------------------------
# Wrapper: pad to lane/sublane-aligned shapes, tile rows over a parallel grid
# --------------------------------------------------------------------------
def highway_forward(params, x, *, dropout_key, tile_n=256):
    """x: (..., D) float32 -> (..., D) float32 (requires in_dim == out_dim)."""
    wg, bg, wt, bt = params["wg"], params["bg"], params["wt"], params["bt"]
    D = x.shape[-1]
    assert wg.shape == (D, D) and wt.shape == (D, D), \
        "HighwayNet residual (1-g)*x requires in_dim == out_dim"

    lead = x.shape[:-1]
    x2 = x.reshape(-1, D).astype(jnp.float32)
    N = x2.shape[0]

    Dp = _round_up(D, 128)                 # lane-aligned feature dim
    Np = _round_up(max(N, 8), 8)           # sublane-aligned rows
    tn = min(tile_n, Np)
    Np = _round_up(Np, tn)                 # grid divides evenly -> no partial blocks

    # Padded input (zeros in padded rows/cols -> padded outputs are 0, sliced off).
    xp = jnp.zeros((Np, Dp), jnp.float32).at[:N, :D].set(x2)

    # Fused weight [Wg^T | Wt^T] and bias [bg | bt], bf16 weights for the MXU.
    wp = jnp.zeros((Dp, 2 * Dp), jnp.bfloat16)
    wp = wp.at[:D, :D].set(wg.T.astype(jnp.bfloat16))
    wp = wp.at[:D, Dp:Dp + D].set(wt.T.astype(jnp.bfloat16))
    bp = jnp.zeros((1, 2 * Dp), jnp.float32)
    bp = bp.at[0, :D].set(bg)
    bp = bp.at[0, Dp:Dp + D].set(bt)

    # Dropout randomness generated with the portable jax.random API.
    u = jax.random.uniform(dropout_key, (Np, Dp), jnp.float32)

    grid = (Np // tn,)

    # Explicit VMEM budget (double-buffered tiles + resident weights), with margin.
    vmem_bytes = (6 * tn * Dp * 4            # x, u, out tiles (2 buffers each)
                  + 2 * (Dp * 2 * Dp * 2)    # bf16 fused weight (2 buffers)
                  + 2 * (2 * Dp * 4))        # fused bias
    vmem_limit = min(max(2 * vmem_bytes, 4 * 1024 * 1024), 100 * 1024 * 1024)

    kernel = functools.partial(_highway_kernel, d_pad=Dp)
    out = pl.pallas_call(
        kernel,
        out_shape=jax.ShapeDtypeStruct((Np, Dp), jnp.float32),
        grid=grid,
        in_specs=[
            pl.BlockSpec((tn, Dp), lambda i: (i, 0)),        # x tile
            pl.BlockSpec((Dp, 2 * Dp), lambda i: (0, 0)),    # fused weight (resident)
            pl.BlockSpec((1, 2 * Dp), lambda i: (0, 0)),     # fused bias
            pl.BlockSpec((tn, Dp), lambda i: (i, 0)),        # dropout uniforms
        ],
        out_specs=pl.BlockSpec((tn, Dp), lambda i: (i, 0)),
        compiler_params=pltpu.CompilerParams(
            dimension_semantics=("parallel",),
            vmem_limit_bytes=int(vmem_limit)),
    )(xp, wp, bp, u)

    return out[:N, :D].reshape(*lead, D)


# --------------------------------------------------------------------------
# Parameter init (PyTorch nn.Linear default: U(-1/sqrt(in_dim), 1/sqrt(in_dim)))
# --------------------------------------------------------------------------
def init_params(key, dim):
    bound = 1.0 / (dim ** 0.5)
    kg_w, kg_b, kt_w, kt_b = jax.random.split(key, 4)

    def u(k, shape):
        return jax.random.uniform(k, shape, jnp.float32, -bound, bound)

    return dict(
        wg=u(kg_w, (dim, dim)), bg=u(kg_b, (dim,)),   # stored PyTorch-style (out, in)
        wt=u(kt_w, (dim, dim)), bt=u(kt_b, (dim,)),
    )


if __name__ == "__main__":
    B, S, D = 2, 8, 32
    key = jax.random.PRNGKey(0)
    kx, kp, kd = jax.random.split(key, 3)

    x = jax.random.normal(kx, (B, S, D), jnp.float32)
    params = init_params(kp, D)

    out = highway_forward(params, x, dropout_key=kd)
    out = jax.block_until_ready(out)

    assert out.shape == (B, S, D)
    assert bool(jnp.all(jnp.isfinite(out)))
    print("KERNEL_OK")
</pallas_src>

<mosaic_0001>
module attributes {stable_mosaic.version = 11 : i64} {
  func.func @_highway_kernel(%arg0: i32, %arg1: memref<16x128xf32, #tpu.memory_space<vmem>>, %arg2: memref<128x256xbf16, #tpu.memory_space<vmem>>, %arg3: memref<1x256xf32, #tpu.memory_space<vmem>>, %arg4: memref<16x128xf32, #tpu.memory_space<vmem>>, %arg5: memref<16x128xf32, #tpu.memory_space<vmem>>) attributes {dimension_semantics = [#tpu.dimension_semantics<parallel>], iteration_bounds = array<i64: 1>, scalar_prefetch = 0 : i64, scratch_operands = 0 : i64, tpu.core_type = #tpu.core_type<tc>, window_params = [{transform_indices = @transform_0, window_bounds = array<i64: 16, 128>}, {pipeline_mode = #tpu.pipeline_mode<synchronous>, transform_indices = @transform_1, window_bounds = array<i64: 128, 256>}, {pipeline_mode = #tpu.pipeline_mode<synchronous>, transform_indices = @transform_2, window_bounds = array<i64: 1, 256>}, {transform_indices = @transform_3, window_bounds = array<i64: 16, 128>}, {transform_indices = @transform_4, window_bounds = array<i64: 16, 128>}]} {
    %c0 = arith.constant 0 : index
    %c0_0 = arith.constant 0 : index
    %0 = vector.load %arg1[%c0, %c0_0] : memref<16x128xf32, #tpu.memory_space<vmem>>, vector<16x128xf32>
    %1 = arith.truncf %0 : vector<16x128xf32> to vector<16x128xbf16>
    %c0_1 = arith.constant 0 : index
    %c0_2 = arith.constant 0 : index
    %2 = vector.load %arg2[%c0_1, %c0_2] : memref<128x256xbf16, #tpu.memory_space<vmem>>, vector<128x256xbf16>
    %cst = arith.constant dense<0.000000e+00> : vector<16x256xf32>
    %3 = tpu.matmul %1, %2, %cst {dimension_numbers = #tpu.dot_dimension_numbers<[1], [0], [0], [1], [0, 0, 1, 1], [], []>} : vector<16x128xbf16>, vector<128x256xbf16>, vector<16x256xf32> -> vector<16x256xf32>
    %c0_3 = arith.constant 0 : index
    %c0_4 = arith.constant 0 : index
    %4 = vector.load %arg3[%c0_3, %c0_4] : memref<1x256xf32, #tpu.memory_space<vmem>>, vector<1x256xf32>
    %5 = vector.broadcast %4 : vector<1x256xf32> to vector<16x256xf32>
    %6 = arith.addf %3, %5 : vector<16x256xf32>
    %7 = vector.extract_strided_slice %6 {offsets = [0, 0], sizes = [16, 128], strides = [1, 1]} : vector<16x256xf32> to vector<16x128xf32>
    %8 = arith.negf %7 : vector<16x128xf32>
    %9 = math.exp %8 : vector<16x128xf32>
    %cst_5 = arith.constant 1.000000e+00 : f32
    %10 = vector.broadcast %cst_5 : f32 to vector<16x128xf32>
    %11 = arith.addf %10, %9 : vector<16x128xf32>
    %12 = arith.divf %10, %11 : vector<16x128xf32>
    %13 = vector.extract_strided_slice %6 {offsets = [0, 128], sizes = [16, 128], strides = [1, 1]} : vector<16x256xf32> to vector<16x128xf32>
    %cst_6 = arith.constant 0.000000e+00 : f32
    %14 = vector.broadcast %cst_6 : f32 to vector<16x128xf32>
    %15 = arith.maximumf %13, %14 : vector<16x128xf32>
    %c0_7 = arith.constant 0 : index
    %c0_8 = arith.constant 0 : index
    %16 = vector.load %arg4[%c0_7, %c0_8] : memref<16x128xf32, #tpu.memory_space<vmem>>, vector<16x128xf32>
    %cst_9 = arith.constant 2.000000e-01 : f32
    %17 = vector.broadcast %cst_9 : f32 to vector<16x128xf32>
    %18 = arith.cmpf oge, %16, %17 : vector<16x128xf32>
    %19 = arith.extui %18 : vector<16x128xi1> to vector<16x128xi32>
    %20 = arith.sitofp %19 : vector<16x128xi32> to vector<16x128xf32>
    %21 = arith.mulf %15, %20 : vector<16x128xf32>
    %cst_10 = arith.constant 1.250000e+00 : f32
    %22 = vector.broadcast %cst_10 : f32 to vector<16x128xf32>
    %23 = arith.mulf %21, %22 : vector<16x128xf32>
    %24 = arith.mulf %12, %23 : vector<16x128xf32>
    %cst_11 = arith.constant 1.000000e+00 : f32
    %25 = vector.broadcast %cst_11 : f32 to vector<16x128xf32>
    %26 = arith.subf %25, %12 : vector<16x128xf32>
    %27 = arith.mulf %26, %0 : vector<16x128xf32>
    %28 = arith.addf %24, %27 : vector<16x128xf32>
    %c0_12 = arith.constant 0 : index
    %c0_13 = arith.constant 0 : index
    %29 = vector.load %arg5[%c0_12, %c0_13] : memref<16x128xf32, #tpu.memory_space<vmem>>, vector<16x128xf32>
    tpu.vector_store %arg5[%c0_12, %c0_13], %28 {strides = array<i32>} : memref<16x128xf32, #tpu.memory_space<vmem>>, vector<16x128xf32>,
    return
  }
  func.func @transform_0(%arg0: i32) -> (i32, i32) {
    %c0_i32 = arith.constant 0 : i32
    %c0_i32_0 = arith.constant 0 : i32
    return %arg0, %c0_i32 : i32, i32
  }
  func.func @transform_1(%arg0: i32) -> (i32, i32) {
    %c0_i32 = arith.constant 0 : i32
    %c0_i32_0 = arith.constant 0 : i32
    %c0_i32_1 = arith.constant 0 : i32
    return %c0_i32, %c0_i32_0 : i32, i32
  }
  func.func @transform_2(%arg0: i32) -> (i32, i32) {
    %c0_i32 = arith.constant 0 : i32
    %c0_i32_0 = arith.constant 0 : i32
    %c0_i32_1 = arith.constant 0 : i32
    return %c0_i32, %c0_i32_0 : i32, i32
  }
  func.func @transform_3(%arg0: i32) -> (i32, i32) {
    %c0_i32 = arith.constant 0 : i32
    %c0_i32_0 = arith.constant 0 : i32
    return %arg0, %c0_i32 : i32, i32
  }
  func.func @transform_4(%arg0: i32) -> (i32, i32) {
    %c0_i32 = arith.constant 0 : i32
    %c0_i32_0 = arith.constant 0 : i32
    return %arg0, %c0_i32 : i32, i32
  }
}

</mosaic_0001>

<bundles_post_ra>
// kernel: tpu_custom_call.1
= control target key start
LH: loop header
LB: loop body
LE: loop exit
PB: predicated region body
PF: predicated region fallthrough
CT: control target
= control target key end

     0   :  { %9 = vsyncpa [#allocation3], 0  ;;  %s525_s0 = inlined_call_operand.hbm [shape: f32[16,128], index: 0, kind: input, shape index: {}]   ;;  %s526_s1 = inlined_call_operand.hbm [shape: bf16[128,256], index: 1, kind: input, shape index: {}]   ;;  %s527_s2 = inlined_call_operand.vmem [shape: f32[1,256], index: 2, kind: input, shape index: {}]   ;;  %s528_s3 = inlined_call_operand.hbm [shape: f32[16,128], index: 3, kind: input, shape index: {}]   ;;  %s529_s4 = inlined_call_operand.hbm [shape: f32[16,128], index: 4, kind: output, shape index: {}]  }
   0x1   :  { %10 = vsyncpa [#allocation6], 0 }
   0x2   :  { %11 = vsyncpa [#allocation4], 0  ;;  %s422_s15 = smov [#allocation5]   ;;  %s423_s17 = smov [#allocation2]  }
   0x3   :  { %s29_s16 = sshll.u32 %s422_s15, 4  ;;  %s17_s18 = sshll.u32 %s423_s17, 4  ;;  %s30_s16 = int_to_ptr.vmem [resolvable:$true] %s29_s16  ;;  %s455_s18 = int_to_ptr.vmem [resolvable:$true] %s17_s18 }
   0x4   :  { %s328_s21 = scalar_lea.hbm %s526_s1, 2048 }
   0x5   :  { %p329_p0 = scmp.ne.s32.totalorder %s526_s1, %s328_s21  ;;  %p332_p1 = scmp.lt.u32.totalorder %s328_s21, %s526_s1 }
   0x7   :  { %p334_p2 = pnand %p332_p1, %p329_p0 }
   0x9   :  { %337 = shalt.err (!%p334_p2)
}
   0xa   :  { %s338_s26 = scalar_lea.vmem %s30_s16, 2048  ;;  %p343_p4 = scmp.lt.s32.totalorder %s30_s16, %s30_s16 }
   0xb   :  { %p339_p3 = scmp.ne.s32.totalorder %s30_s16, %s338_s26  ;;  %p344_p5 = scmp.lt.s32.totalorder %s338_s26, %s338_s26 }
   0xd   :  { %p345_p6 = por %p344_p5, %p343_p4 }
   0xf   :  { %p346_p7 = pnand %p345_p6, %p339_p3 }
  0x11   :  { %349 = shalt.err (!%p346_p7)
}
  0x12   :  { %s424_s27 = smov 128   ;;  %s425_s28 = smov 8  }
  0x13   :  { %35 = dma.hbm_to_vmem [thread:$0]  %s526_s1, 2048, %s30_s16, [#allocation6], %s424_s27, %s424_s27, %s425_s28  }
  0x14   :  { %s350_s7 = scalar_lea.hbm %s525_s0, 256 }
  0x15   :  { %p351_p8 = scmp.ne.s32.totalorder %s525_s0, %s350_s7  ;;  %p354_p9 = scmp.lt.u32.totalorder %s350_s7, %s525_s0 }
  0x17   :  { %p356_p10 = pnand %p354_p9, %p351_p8 }
  0x19   :  { %359 = shalt.err (!%p356_p10)
}
  0x1a   :  { %s360_s12 = scalar_lea.vmem %s455_s18, 256  ;;  %p365_p12 = scmp.lt.s32.totalorder %s455_s18, %s455_s18 }
  0x1b   :  { %p361_p11 = scmp.ne.s32.totalorder %s455_s18, %s360_s12  ;;  %p366_p13 = scmp.lt.s32.totalorder %s360_s12, %s360_s12 }
  0x1d   :  { %p367_p0 = por %p366_p13, %p365_p12 }
  0x1f   :  { %p368_p1 = pnand %p367_p0, %p361_p11 }
  0x21   :  { %371 = shalt.err (!%p368_p1)
}
  0x22   :  { %23 = dma.hbm_to_vmem [thread:$0]  %s525_s0, 256, %s455_s18, [#allocation3], %s424_s27, %s424_s27, %s425_s28  }
  0x23   :  { %s426_s14 = smov [#allocation7]   ;;  %s372_s19 = scalar_lea.hbm %s528_s3, 256 }
  0x24   :  { %s43_s15 = sshll.u32 %s426_s14, 4  ;;  %p373_p2 = scmp.ne.s32.totalorder %s528_s3, %s372_s19  ;;  %s44_s15 = int_to_ptr.vmem [resolvable:$true] %s43_s15 }
  0x25   :  { %p376_p3 = scmp.lt.u32.totalorder %s372_s19, %s528_s3 }
  0x27   :  { %p378_p4 = pnand %p376_p3, %p373_p2 }
  0x29   :  { %381 = shalt.err (!%p378_p4)
}
  0x2a   :  { %s382_s24 = scalar_lea.vmem %s44_s15, 256  ;;  %p387_p6 = scmp.lt.s32.totalorder %s44_s15, %s44_s15 }
  0x2b   :  { %p383_p5 = scmp.ne.s32.totalorder %s44_s15, %s382_s24  ;;  %p388_p7 = scmp.lt.s32.totalorder %s382_s24, %s382_s24 }
  0x2d   :  { %p389_p8 = por %p388_p7, %p387_p6 }
  0x2f   :  { %p390_p9 = pnand %p389_p8, %p383_p5 }
  0x31   :  { %393 = shalt.err (!%p390_p9)
}
  0x32   :  { %49 = dma.hbm_to_vmem [thread:$0]  %s528_s3, 256, %s44_s15, [#allocation6], %s424_s27, %s424_s27, %s425_s28  }
  0x33   :  { %416 = dma.done.wait [#allocation3], 256  }
  0x34   :  { %417 = vsyncadd [#allocation3], 4294967040 }
  0x35   :  { %418 = dma.done.wait [#allocation6], 2304  }
  0x36   :  { %419 = vsyncadd [#allocation6], 4294964992  ;;  %v427_v0 = vmov 0   ;;  %v296_v1 = vld [vmem:[#allocation5 + $0x4] ss:$8 sps:$4 sm:$0xff]   ;;  %v60_v17 = vld [vmem:[#allocation2] sm:$0xff]  ;;  %v81_v20 = vlaneseq }
  0x37   :  { %203 = vmatprep.mubr.bf16.mxu0 %v427_v0  ;;  %v298_v2 = vld [vmem:[#allocation5] ss:$8 sps:$4 sm:$0xff]   ;;  %171 = vmatprep.subr.bf16.mxu0 %v296_v1  ;;  %v299_v3 = vld [vmem:[#allocation5 + $0x14] ss:$8 sps:$4 sm:$0xff]   ;;  %v301_v4 = vld [vmem:[#allocation5 + $0x10] ss:$8 sps:$4 sm:$0xff]  }
  0x38   :  { %172 = vmatpush1.bf16.msra.mxu0 %v298_v2  ;;  %v302_v5 = vld [vmem:[#allocation5 + $0x24] ss:$8 sps:$4 sm:$0xff]   ;;  %v304_v6 = vld [vmem:[#allocation5 + $0x20] ss:$8 sps:$4 sm:$0xff]   ;;  %v305_v7 = vld [vmem:[#allocation5 + $0x34] ss:$8 sps:$4 sm:$0xff]  }
  0x39   :  { %173 = vmatprep.subr.bf16.mxu0 %v299_v3  ;;  %v307_v8 = vld [vmem:[#allocation5 + $0x30] ss:$8 sps:$4 sm:$0xff]   ;;  %v308_v9 = vld [vmem:[#allocation5 + $0x44] ss:$8 sps:$4 sm:$0xff]   ;;  %v310_v10 = vld [vmem:[#allocation5 + $0x40] ss:$8 sps:$4 sm:$0xff]  }
  0x3a   :  { %v311_v11 = vld [vmem:[#allocation5 + $0x54] ss:$8 sps:$4 sm:$0xff]   ;;  %v313_v12 = vld [vmem:[#allocation5 + $0x50] ss:$8 sps:$4 sm:$0xff]   ;;  %v314_v13 = vld [vmem:[#allocation5 + $0x64] ss:$8 sps:$4 sm:$0xff]  }
  0x3b   :  { %v316_v14 = vld [vmem:[#allocation5 + $0x60] ss:$8 sps:$4 sm:$0xff]   ;;  %v317_v15 = vld [vmem:[#allocation5 + $0x74] ss:$8 sps:$4 sm:$0xff]   ;;  %v319_v16 = vld [vmem:[#allocation5 + $0x70] ss:$8 sps:$4 sm:$0xff]  }
  0x3c   :  { %174 = vmatpush1.bf16.msra.mxu0 %v301_v4  ;;  %v61_v18 = vld [vmem:[#allocation2 + $0x8] sm:$0xff]  ;;  %v82_v21 = vshrl.u32 %v81_v20, 7  ;;  %v79_v23 = vld [vmem:[%s527_s2] sm:$0x3]  ;;  %v228_v35 = vld [vmem:[#allocation7] sm:$0xff]  ;;  %v428_v44 = vmov 0.0  }
  0x3d   :  { %175 = vmatprep.subr.bf16.mxu0 %v302_v5  ;;  %v62_v19 = vpack.c.bf16 %v61_v18, %v60_v17  ;;  %v229_v39 = vld [vmem:[#allocation7 + $0x8] sm:$0xff]  ;;  %vm230_vm0 = vcmp.ge.f32.partialorder %v228_v35, 0.2  ;;  %s429_s2 = smov [#allocation8]  }
  0x3e   :  { %v83_v22 = vsub.s32 0, %v82_v21  ;;  %v87_v33 = vsub.s32 1, %v82_v21  ;;  %vm231_vm1 = vcmp.ge.f32.partialorder %v229_v39, 0.2  ;;  %v286_v45 = vsel %vm230_vm0, 1.0, %v428_v44  ;;  %s255_s26 = sshll.u32 %s429_s2, 4  ;;  %s256_s26 = int_to_ptr.vmem [resolvable:$true] %s255_s26 }
  0x3f   :  { %v287_v47 = vsel %vm231_vm1, 1.0, %v428_v44  ;;  %s394_s29 = scalar_lea.vmem %s256_s26, 256  ;;  %p399_p11 = scmp.lt.s32.totalorder %s256_s26, %s256_s26 }
  0x40   :  { %176 = vmatpush1.bf16.msra.mxu0 %v304_v6  ;;  %v84_v24 = vrot.slane %v79_v23, %v83_v22  ;;  %v88_v34 = vrot.slane %v79_v23, %v87_v33  ;;  %p395_p10 = scmp.ne.s32.totalorder %s256_s26, %s394_s29  ;;  %p400_p12 = scmp.lt.s32.totalorder %s394_s29, %s394_s29 }
  0x41   :  { %177 = vmatprep.subr.bf16.mxu0 %v305_v7 }
  0x42   :  { %p401_p13 = por %p400_p12, %p399_p11 }
  0x44   :  { %178 = vmatpush1.bf16.msra.mxu0 %v307_v8  ;;  %p402_p0 = pnand %p401_p13, %p395_p10 }
  0x45   :  { %179 = vmatprep.subr.bf16.mxu0 %v308_v9 }
  0x48   :  { %180 = vmatpush1.bf16.msra.mxu0 %v310_v10 }
  0x49   :  { %181 = vmatprep.subr.bf16.mxu0 %v311_v11 }
  0x4c   :  { %182 = vmatpush1.bf16.msra.mxu0 %v313_v12 }
  0x4d   :  { %183 = vmatprep.subr.bf16.mxu0 %v314_v13 }
  0x50   :  { %184 = vmatpush1.bf16.msra.mxu0 %v316_v14 }
  0x51   :  { %185 = vmatprep.subr.bf16.mxu0 %v317_v15 }
  0x54   :  { %186 = vmatpush1.bf16.msra.mxu0 %v319_v16 }
  0x57   :  { %204 = vmatmul.mubr.bf16.vlgmr.msra.gmra.mrb[0].mxu0 %v62_v19 }
 0x12a   :  { %v205_v25 = vpop.f32.mrb[0].mxu0 }
 0x12b   :  { %v206_v26 = vadd.f32 %v205_v25, %v84_v24  ;;  %v207_v27 = vpop.f32.mrb[1].mxu0 }
 0x12c   :  { %v209_v28 = vpop.f32.mrb[2].mxu0  ;;  %v208_v37 = vadd.f32 %v207_v27, %v88_v34 }
 0x12d   :  { %v284_v29 = vmul.f32 -1.442695, %v206_v26  ;;  %v210_v30 = vadd.f32 %v209_v28, %v84_v24  ;;  %v211_v31 = vpop.f32.mrb[3].mxu0 }
 0x12e   :  { %v212_v41 = vadd.f32 %v211_v31, %v88_v34  ;;  %v226_v43 = vmax.f32 %v208_v37, 0.0 }
 0x12f   :  { %320 = vpow2.f32 %v284_v29  ;;  %v285_v32 = vmul.f32 -1.442695, %v210_v30 }
 0x130   :  { %v227_v46 = vmax.f32 %v212_v41, 0.0  ;;  %v236_v48 = vmul.f32 %v286_v45, %v226_v43 }
 0x131   :  { %322 = vpow2.f32 %v285_v32 }
 0x132   :  { %v237_v49 = vmul.f32 %v287_v47, %v227_v46  ;;  %v238_v50 = vmul.f32 1.25, %v236_v48 }
 0x134   :  { %v239_v53 = vmul.f32 1.25, %v237_v49 }
 0x139   :  { %v321_v36 = vpop.eup %320 }
 0x13a   :  { %v220_v38 = vadd.f32 1.0, %v321_v36 }
 0x13b   :  { %v323_v40 = vpop.eup %322 }
 0x13c   :  { %324 = vrcp.f32 %v220_v38  ;;  %v221_v42 = vadd.f32 1.0, %v323_v40 }
 0x13e   :  { %326 = vrcp.f32 %v221_v42 }
 0x146   :  { %v325_v51 = vpop.eup %324 }
 0x147   :  { %v240_v52 = vmul.f32 %v325_v51, %v238_v50  ;;  %v242_v54 = vsub.f32 1.0, %v325_v51 }
 0x148   :  { %v327_v55 = vpop.eup %326 }
 0x149   :  { %v241_v56 = vmul.f32 %v327_v55, %v239_v53  ;;  %v243_v57 = vsub.f32 1.0, %v327_v55  ;;  %v244_v58 = vmul.f32 %v242_v54, %v60_v17 }
 0x14b   :  { %v245_v59 = vmul.f32 %v243_v57, %v61_v18  ;;  %v246_v60 = vadd.f32 %v244_v58, %v240_v52 }
 0x14d   :  { %v247_v61 = vadd.f32 %v245_v59, %v241_v56  ;;  %248 = vst [vmem:[#allocation8] sm:$0xff] %v246_v60 }
 0x14f   :  { %249 = vst [vmem:[#allocation8 + $0x8] sm:$0xff] %v247_v61 }
 0x150   :  { %405 = shalt.err (!%p402_p0)
}
 0x151   :  { %s406_s6 = scalar_lea.hbm %s529_s4, 256 }
 0x152   :  { %p407_p1 = scmp.ne.s32.totalorder %s529_s4, %s406_s6  ;;  %p410_p2 = scmp.lt.u32.totalorder %s406_s6, %s529_s4 }
 0x154   :  { %p412_p3 = pnand %p410_p2, %p407_p1 }
 0x156   :  { %415 = shalt.err (!%p412_p3)
}
 0x157   :  { %261 = dma.vmem_to_hbm [thread:$0]  %s256_s26, 256, %s529_s4, [#allocation4], %s424_s27, %s424_s27, %s425_s28  }
 0x158   :  { %420 = dma.done.wait [#allocation4], 256  }
 0x159   :  { %421 = vsyncadd [#allocation4], 4294967040 }
 0x15a   :  { %265 = vsyncpa [#allocation3], 1 }
 0x15b   :  { %266 = vsyncpa [#allocation6], 1 }
 0x15c   :  { %267 = vsyncpa [#allocation4], 1 }

</bundles_post_ra>
